<compile_context>
chip_gen: v5e
topology: v5e:2x2
jax: 0.10.0
libtpu: 0.0.40
codegen_flags: <defaults>
</compile_context>

<pallas_src>
import functools

import jax
import jax.numpy as jnp
from jax import lax
from jax.experimental import pallas as pl
from jax.experimental.pallas import tpu as pltpu


def _ce_partial_kernel(x_ref, t_ref, ce_out, *, label_smoothing, n_rows, block_n):
    """Per-block partial sum of the (optionally label-smoothed) cross entropy."""
    i = pl.program_id(0)

    x = x_ref[...].astype(jnp.float32)            # (bn, C), cast on-tile
    t = t_ref[...]                                # (bn, 1) int32

    # Stable log-softmax pieces; keep everything relative to the row max so
    # (x - m) is reused by the exp, the target gather and the smoothing term.
    m = jnp.max(x, axis=-1, keepdims=True)                             # (bn, 1)
    xm = x - m
    lse_m = jnp.log(jnp.sum(jnp.exp(xm), axis=-1, keepdims=True))      # lse - m

    col = lax.broadcasted_iota(jnp.int32, x.shape, 1)                  # (bn, C)
    tgt_m = jnp.sum(jnp.where(col == t, xm, 0.0), axis=-1, keepdims=True)  # x[t] - m
    nll = lse_m - tgt_m                                                # (bn, 1)

    if label_smoothing is not None:
        eps = float(label_smoothing)
        # mean_c(lse - x_c) == (lse - m) - mean_c(x_c - m)
        smooth = lse_m - jnp.mean(xm, axis=-1, keepdims=True)
        per_sample = (1.0 - eps) * nll + eps * smooth
    else:
        per_sample = nll

    needs_mask = (n_rows % block_n) != 0          # static (Python) decision
    if needs_mask:
        # Row-local garbage in the padded tail can only poison its own row's
        # per_sample value; a single (bn, 1) select removes it.
        row = lax.broadcasted_iota(jnp.int32, (x.shape[0], 1), 0) + i * block_n
        per_sample = jnp.where(row < n_rows, per_sample, 0.0)

    ce_out[...] = jnp.sum(per_sample).reshape(1, 1, 1)


def _round_down(x, m):
    return (x // m) * m


def _pick_block_n(n_rows, n_cols, itemsize, sublane, vmem_budget_bytes):
    # Per-row VMEM cost: double-buffered native-dtype logits tile + a handful of
    # live (bn, C) f32 temporaries + the lane-padded (bn, 1)->(bn, 128) int32
    # target tile, double-buffered.
    per_row = n_cols * (2 * itemsize + 4 * 4) + 2 * 128 * 4
    bn = max(sublane, _round_down(vmem_budget_bytes // per_row, sublane))
    bn = min(bn, 1024)                                   # diminishing returns past ~1K rows
    cap = max(sublane, _round_down(n_rows, sublane))     # don't exceed the data
    return int(min(bn, cap))


def focal_loss(logits, targets, *, class_weights=None, gamma=2,
               label_smoothing=None, reduction="mean",
               block_n=None, vmem_budget_bytes=24 * 1024 * 1024):
    """Pallas implementation of FocalLoss.forward (inputs=(N, C), target=(N,))."""
    if reduction not in ("mean", "sum", "none"):
        raise NotImplementedError(f"Reduction {reduction} not implemented.")
    N, C = logits.shape

    itemsize = jnp.dtype(logits.dtype).itemsize
    sublane = max(8, 32 // max(itemsize, 1))      # 8 f32 / 16 bf16 / 32 int8-fp8
    if block_n is None:
        block_n = _pick_block_n(N, C, itemsize, sublane, vmem_budget_bytes)
    grid_n = pl.cdiv(N, block_n)

    t2 = targets.astype(jnp.int32).reshape(N, 1)

    kernel = functools.partial(_ce_partial_kernel, label_smoothing=label_smoothing,
                               n_rows=N, block_n=block_n)

    ce_partials = pl.pallas_call(
        kernel,
        out_shape=jax.ShapeDtypeStruct((grid_n, 1, 1), jnp.float32),
        grid=(grid_n,),
        in_specs=[
            pl.BlockSpec((block_n, C), lambda i: (i, 0)),   # logits, native dtype
            pl.BlockSpec((block_n, 1), lambda i: (i, 0)),   # targets
        ],
        out_specs=pl.BlockSpec((1, 1, 1), lambda i: (i, 0, 0)),
        compiler_params=pltpu.CompilerParams(
            dimension_semantics=("parallel",),              # megacore-shardable (v7x)
            vmem_limit_bytes=48 * 1024 * 1024),
    )(logits, t2)

    # --- O(N) / scalar glue, mirroring the PyTorch module exactly ---
    ce = jnp.sum(ce_partials) / N                 # nn.CrossEntropyLoss default 'mean'
    pt = jnp.exp(-ce)
    if class_weights is not None:
        w = class_weights[targets.astype(jnp.int32)].astype(jnp.float32)
    else:
        w = jnp.ones((N,), jnp.float32)
    floss = w * (1.0 - pt) ** gamma * ce
    if reduction == "mean":
        return jnp.mean(floss)
    if reduction == "sum":
        return jnp.sum(floss)
    return floss


if __name__ == "__main__":
    key = jax.random.PRNGKey(0)
    k1, k2, k3 = jax.random.split(key, 3)

    # Small shapes consistent with the module: (N, C) logits, (N,) class targets.
    N, C = 20, 16                      # N deliberately NOT a multiple of the tile
    logits = jax.random.normal(k1, (N, C), dtype=jnp.float32)
    targets = jax.random.randint(k2, (N,), 0, C, dtype=jnp.int32)

    def ref_focal(x, t, class_weights, gamma, label_smoothing, reduction):
        xf = x.astype(jnp.float32)
        logp = jax.nn.log_softmax(xf, axis=-1)
        nll = -jnp.take_along_axis(logp, t[:, None].astype(jnp.int32), axis=-1)[:, 0]
        if label_smoothing is not None:
            per = (1.0 - label_smoothing) * nll + label_smoothing * (-jnp.mean(logp, axis=-1))
        else:
            per = nll
        ce = jnp.mean(per)
        pt = jnp.exp(-ce)
        if class_weights is not None:
            w = class_weights[t.astype(jnp.int32)].astype(jnp.float32)
        else:
            w = jnp.ones((t.shape[0],), jnp.float32)
        fl = w * (1.0 - pt) ** gamma * ce
        if reduction == "mean":
            return jnp.mean(fl)
        if reduction == "sum":
            return jnp.sum(fl)
        return fl

    # 1) module defaults: weights=None, reduction='mean', label_smoothing=None, gamma=2
    out = focal_loss(logits, targets)
    out = jax.block_until_ready(out)
    ref = ref_focal(logits, targets, None, 2, None, "mean")
    assert jnp.allclose(out, ref, atol=1e-5, rtol=1e-5), (float(out), float(ref))

    # 2) bf16 logits streamed natively + class weights + label smoothing + 'none'
    logits_bf16 = logits.astype(jnp.bfloat16)
    cw = jax.random.uniform(k3, (C,), dtype=jnp.float32) + 0.5
    out2 = focal_loss(logits_bf16, targets, class_weights=cw, gamma=2,
                      label_smoothing=0.1, reduction="none")
    out2 = jax.block_until_ready(out2)
    ref2 = ref_focal(logits_bf16, targets, cw, 2, 0.1, "none")
    assert jnp.allclose(out2, ref2, atol=1e-4, rtol=1e-4), (out2, ref2)

    # 3) 'sum' reduction + exact-multiple N (no masking path)
    N3 = 16
    out3 = focal_loss(logits[:N3], targets[:N3], class_weights=cw, reduction="sum")
    out3 = jax.block_until_ready(out3)
    ref3 = ref_focal(logits[:N3], targets[:N3], cw, 2, None, "sum")
    assert jnp.allclose(out3, ref3, atol=1e-4, rtol=1e-4), (float(out3), float(ref3))

    print("KERNEL_OK")
</pallas_src>

<mosaic_0001>
module attributes {stable_mosaic.version = 11 : i64} {
  func.func @_ce_partial_kernel(%arg0: i32, %arg1: memref<16x16xf32, #tpu.memory_space<vmem>>, %arg2: memref<16x1xi32, #tpu.memory_space<vmem>>, %arg3: memref<1x1x1xf32, #tpu.memory_space<vmem>>) attributes {dimension_semantics = [#tpu.dimension_semantics<parallel>], iteration_bounds = array<i64: 2>, scalar_prefetch = 0 : i64, scratch_operands = 0 : i64, tpu.core_type = #tpu.core_type<tc>, window_params = [{transform_indices = @transform_0, window_bounds = array<i64: 16, 16>}, {transform_indices = @transform_1, window_bounds = array<i64: 16, 1>}, {transform_indices = @transform_2, window_bounds = array<i64: 1, 1, 1>}]} {
    %c0 = arith.constant 0 : index
    %c0_0 = arith.constant 0 : index
    %0 = vector.load %arg1[%c0, %c0_0] : memref<16x16xf32, #tpu.memory_space<vmem>>, vector<16x16xf32>
    %c0_1 = arith.constant 0 : index
    %c0_2 = arith.constant 0 : index
    %1 = vector.load %arg2[%c0_1, %c0_2] : memref<16x1xi32, #tpu.memory_space<vmem>>, vector<16x1xi32>
    %cst = arith.constant dense<0xFF800000> : vector<16xf32>
    %2 = vector.multi_reduction <maximumf>, %0, %cst [1] : vector<16x16xf32> to vector<16xf32>
    %3 = vector.shape_cast %2 : vector<16xf32> to vector<16x1xf32>
    %4 = vector.broadcast %3 : vector<16x1xf32> to vector<16x16xf32>
    %5 = arith.subf %0, %4 : vector<16x16xf32>
    %6 = math.exp %5 : vector<16x16xf32>
    %cst_3 = arith.constant dense<0.000000e+00> : vector<16xf32>
    %7 = vector.multi_reduction <add>, %6, %cst_3 [1] : vector<16x16xf32> to vector<16xf32>
    %8 = vector.shape_cast %7 : vector<16xf32> to vector<16x1xf32>
    %9 = math.log %8 : vector<16x1xf32>
    %10 = tpu.iota {dimensions = array<i32: 1>} : vector<16x16xi32>
    %11 = vector.broadcast %1 : vector<16x1xi32> to vector<16x16xi32>
    %12 = arith.cmpi eq, %10, %11 : vector<16x16xi32>
    %cst_4 = arith.constant 0.000000e+00 : f32
    %13 = vector.broadcast %cst_4 : f32 to vector<16x16xf32>
    %14 = arith.select %12, %5, %13 : vector<16x16xi1>, vector<16x16xf32>
    %cst_5 = arith.constant dense<0.000000e+00> : vector<16xf32>
    %15 = vector.multi_reduction <add>, %14, %cst_5 [1] : vector<16x16xf32> to vector<16xf32>
    %16 = vector.shape_cast %15 : vector<16xf32> to vector<16x1xf32>
    %17 = arith.subf %9, %16 : vector<16x1xf32>
    %18 = tpu.iota {dimensions = array<i32: 0>} : vector<16x1xi32>
    %c16_i32 = arith.constant 16 : i32
    %19 = arith.muli %arg0, %c16_i32 : i32
    %20 = vector.broadcast %19 : i32 to vector<16x1xi32>
    %21 = arith.addi %18, %20 : vector<16x1xi32>
    %c20_i32 = arith.constant 20 : i32
    %22 = vector.broadcast %c20_i32 : i32 to vector<16x1xi32>
    %23 = arith.cmpi slt, %21, %22 : vector<16x1xi32>
    %cst_6 = arith.constant 0.000000e+00 : f32
    %24 = vector.broadcast %cst_6 : f32 to vector<16x1xf32>
    %25 = arith.select %23, %17, %24 : vector<16x1xi1>, vector<16x1xf32>
    %26 = vector.shape_cast %25 : vector<16x1xf32> to vector<1x16x1xf32>
    %cst_7 = arith.constant dense<0.000000e+00> : vector<1xf32>
    %27 = vector.multi_reduction <add>, %26, %cst_7 [1, 2] : vector<1x16x1xf32> to vector<1xf32>
    %28 = vector.shape_cast %27 : vector<1xf32> to vector<1x1x1xf32>
    %29 = vector.extract %28[0, 0, 0] : f32 from vector<1x1x1xf32>
    %30 = vector.broadcast %29 : f32 to vector<1x1x1xf32>
    %c0_8 = arith.constant 0 : index
    %c0_9 = arith.constant 0 : index
    %c0_10 = arith.constant 0 : index
    %31 = vector.load %arg3[%c0_8, %c0_9, %c0_10] : memref<1x1x1xf32, #tpu.memory_space<vmem>>, vector<1x1x1xf32>
    tpu.vector_store %arg3[%c0_8, %c0_9, %c0_10], %30 {strides = array<i32>} : memref<1x1x1xf32, #tpu.memory_space<vmem>>, vector<1x1x1xf32>,
    return
  }
  func.func @transform_0(%arg0: i32) -> (i32, i32) {
    %c0_i32 = arith.constant 0 : i32
    %c0_i32_0 = arith.constant 0 : i32
    return %arg0, %c0_i32 : i32, i32
  }
  func.func @transform_1(%arg0: i32) -> (i32, i32) {
    %c0_i32 = arith.constant 0 : i32
    %c0_i32_0 = arith.constant 0 : i32
    return %arg0, %c0_i32 : i32, i32
  }
  func.func @transform_2(%arg0: i32) -> (i32, i32, i32) {
    %c0_i32 = arith.constant 0 : i32
    %c0_i32_0 = arith.constant 0 : i32
    %c0_i32_1 = arith.constant 0 : i32
    return %arg0, %c0_i32, %c0_i32_0 : i32, i32, i32
  }
}

</mosaic_0001>

<bundles_post_ra>
// kernel: tpu_custom_call.1
= control target key start
LH: loop header
LB: loop body
LE: loop exit
PB: predicated region body
PF: predicated region fallthrough
CT: control target
= control target key end

     0   :  { %s394_s9 = smov 0   ;;  %s426_s0 = inlined_call_operand.vmem [shape: f32[20,16], index: 0, kind: input, shape index: {}]   ;;  %s427_s1 = inlined_call_operand.vmem [shape: s32[20,1], index: 1, kind: input, shape index: {}]   ;;  %s428_s2 = inlined_call_operand.vmem [shape: f32[2,1,1], index: 2, kind: output, shape index: {}]  }
   0x1 LB: > { %s400_s10 = sadd.s32 4294967295, %s376_s9   ;;  %p341_p0 = scmp.ge.s32.totalorder %s376_s9, 1  ;;  %s376_s9 = sphi %s394_s9, %s12_s9  }
   0x2   : > { %p140_p1 = scmp.lt.s32.totalorder %s376_s9, 3 }
   0x4   : > { %p141_p2 = pnand %p341_p0, %p140_p1 }
   0x5   : > { %s342_s11 = sshll.u32 (!%p141_p2), %s400_s10, 1  ;;  %s346_s19 = sshll.u32 (!%p141_p2), %s400_s10, 4 }
   0x6   : > { %144 = sbr.rel (%p141_p2) target bundleno = 463 (0x1cf), region = 28  ;;  %p178_p3 = scmp.lt.s32.totalorder (!%p141_p2), %s342_s11, 2 }
   0x7   : > { %p201_p4 = scmp.lt.s32.totalorder (!%p141_p2), %s400_s10, 1 }
   0xb   : > { %v378_v0 = vmov 0   ;;  %s430_s11 = smov (!%p178_p3, %s342_s11), 2  ;;  %vm208_vm0 = vcmask 130048   ;;  %v231_v7 = vlaneseq  ;;  %v255_v29 = vstv %s346_s19  ;;  %s432_s10 = smov (!%p201_p4, %s400_s10), 1 }
   0xc   : > { %360 = vset.pattern.permute.xlu1 %v378_v0  ;;  %361 = vset.pattern.permute.xlu0 %v378_v0  ;;  %s343_s12 = sshll.u32 %s430_s11, 3  ;;  %vm262_vm5 = vcmask 7168   ;;  %s203_s22 = scalar_lea.vmem %s428_s2, %s432_s10  ;;  %vm276_vm6 = vcmask 0  }
   0xd   : > { %s181_s15 = scalar_lea.vmem %s426_s0, %s343_s12  ;;  %s195_s18 = scalar_lea.vmem %s427_s1, %s343_s12  ;;  %v232_v8 = vand.u32 127, %v231_v7  ;;  %v252_v27 = vshrl.u32 %v231_v7, 7 }
   0xe   : > { %v204_v1 = vld [vmem:[%s181_s15] sm:$0xff]  ;;  %v205_v4 = vld [vmem:[%s181_s15 + $0x8] sm:$0xff] }
   0xf   : > { %v206_v2 = vld [vmem:[%s195_s18] sm:$0xff]  ;;  %v209_v3 = vsel %vm208_vm0, %v204_v1, -inf  ;;  %v207_v5 = vld [vmem:[%s195_s18 + $0x8] sm:$0xff]  ;;  %v212_v6 = vsel %vm208_vm0, %v205_v4, -inf  ;;  %v253_v30 = vadd.s32 8, %v252_v27  ;;  %v256_v32 = vadd.s32 %v255_v29, %v252_v27 }
  0x10   : > { %234 = vperm.xlu1 %360, %v206_v2   ;;  %210 = vmax.xlane.f32.xlu0 %v209_v3 }
  0x11   : > { %v257_v34 = vadd.s32 %v255_v29, %v253_v30  ;;  %vm258_vm3 = vcmp.lt.s32.totalorder %v256_v32, 20 }
  0x13   : > { %vm259_vm4 = vcmp.lt.s32.totalorder %v257_v34, 20 }
  0x18   : > { %237 = vperm.xlu1 %360, %v207_v5   ;;  %213 = vmax.xlane.f32.xlu0 %v212_v6 }
  0x82   : > { %v235_v9 = vpop.permute.xlu1 %234 }
  0x83   : > { %v211_v10 = vpop.xlane.xlu0 %210  ;;  %vm239_vm1 = vcmp.eq.s32.totalorder %v232_v8, %v235_v9 }
  0x84   : > { %v215_v11 = vsub.f32 %v204_v1, %v211_v10 }
  0x86   : > { %v217_v12 = vmul.f32 1.442695, %v215_v11  ;;  %v241_v13 = vsel %vm239_vm1, %v215_v11, 0.0 }
  0x87   : > { %v243_v14 = vsel %vm208_vm0, %v241_v13, 0.0 }
  0x88   : > { %362 = vpow2.f32 %v217_v12  ;;  %244 = vadd.xlane.f32.xlu0 %v243_v14 }
  0x8a   : > { %v238_v15 = vpop.permute.xlu1 %237 }
  0x8b   : > { %v214_v16 = vpop.xlane.xlu0 %213  ;;  %vm240_vm2 = vcmp.eq.s32.totalorder %v232_v8, %v238_v15 }
  0x8c   : > { %v216_v17 = vsub.f32 %v205_v4, %v214_v16 }
  0x8e   : > { %v363_v18 = vpop.eup %362  ;;  %v219_v19 = vmul.f32 1.442695, %v216_v17  ;;  %v242_v20 = vsel %vm240_vm2, %v216_v17, 0.0 }
  0x8f   : > { %v221_v21 = vsel %vm208_vm0, %v363_v18, 0.0  ;;  %v246_v22 = vsel %vm208_vm0, %v242_v20, 0.0 }
  0x90   : > { %364 = vpow2.f32 %v219_v19  ;;  %222 = vadd.xlane.f32.xlu2 %v221_v21  ;;  %247 = vadd.xlane.f32.xlu1 %v246_v22 }
  0x96   : > { %v365_v23 = vpop.eup %364 }
  0x97   : > { %v224_v24 = vsel %vm208_vm0, %v365_v23, 0.0 }
  0x98   : > { %225 = vadd.xlane.f32.xlu2 %v224_v24 }
  0xfb   : > { %v245_v33 = vpop.xlane.xlu0 %244 }
 0x103   : > { %v223_v25 = vpop.xlane.xlu2 %222  ;;  %v248_v38 = vpop.xlane.xlu1 %247 }
 0x104   : > { %366 = vlog2.f32 %v223_v25 }
 0x10a   : > { %v367_v26 = vpop.eup %366 }
 0x10b   : > { %v226_v28 = vpop.xlane.xlu2 %225  ;;  %v228_v31 = vmul.f32 0.6931472, %v367_v26 }
 0x10c   : > { %368 = vlog2.f32 %v226_v28 }
 0x10d   : > { %v249_v35 = vsub.f32 %v228_v31, %v245_v33 }
 0x10f   : > { %v260_v40 = vsel %vm258_vm3, %v249_v35, 0.0 }
 0x110   : > { %v263_v42 = vsel %vm262_vm5, %v260_v40, 0.0 }
 0x112   : > { %v369_v36 = vpop.eup %368 }
 0x113   : > { %v230_v37 = vmul.f32 0.6931472, %v369_v36 }
 0x115   : > { %v250_v39 = vsub.f32 %v230_v37, %v248_v38 }
 0x117   : > { %v261_v41 = vsel %vm259_vm4, %v250_v39, 0.0 }
 0x118   : > { %v264_v43 = vsel %vm262_vm5, %v261_v41, 0.0 }
 0x119   : > { %v265_v44 = vadd.f32 %v264_v43, %v263_v42 }
 0x11b   : > { %266 = vadd.xlane.f32.xlu2 %v265_v44 }
 0x18e   : > { %v267_v45 = vpop.xlane.xlu2 %266 }
 0x18f   : > { %v268_v46 = vrot.slane %v267_v45, 4 }
 0x191   : > { %v269_v47 = vadd.f32 %v268_v46, %v267_v45 }
 0x193   : > { %v270_v48 = vrot.slane %v269_v47, 2 }
 0x195   : > { %v271_v49 = vadd.f32 %v270_v48, %v269_v47 }
 0x197   : > { %v272_v50 = vrot.slane %v271_v49, 1 }
 0x199   : > { %v273_v51 = vadd.f32 %v272_v50, %v271_v49 }
 0x19b   : > { %349 = vpush %v273_v51 }
 0x1cc   : > { %s350_s23 = spop %349 }
 0x1cd   : > { %v275_v52 = vstv %s350_s23 }
 0x1ce   : > { %277 = vst.msk [vmem:[%s203_s22] sm:$0x1] %vm276_vm6, %v275_v52 }
 0x1cf PF: > { %s12_s9 = sadd.s32 1, %s376_s9  }
 0x1d0   : > { %p9_p5 = scmp.ge.s32.totalorder %s12_s9, 4  }
 0x1d2   :  { %11 = sbr.rel (!%p9_p5) target bundleno = 1 (0x1), region = 61 }

</bundles_post_ra>
